<compile_context>
chip_gen: v7x
topology: tpu7x:2x2x1
jax: 0.10.0
libtpu: 0.0.40
codegen_flags: <defaults>
</compile_context>

<pallas_src>
import math
from functools import partial

import jax
import jax.numpy as jnp
from jax.experimental import pallas as pl
from jax.experimental.pallas import tpu as pltpu

EPS = 1e-6
BODIES_PER_BATCH = 5
HIDDEN = 16
NUM_LAYERS = 3          # first layer + (NUM_LAYERS - 1) residual set layers
IN_DIM = 2              # canon_feature == 'pv'
OUT_DIM = 4             # rotation (3) + translation (1)


# --------------------------------------------------------------------------- #
# Pallas kernel
# --------------------------------------------------------------------------- #
def vndeepsets_kernel(
    feat_ref, A_ref, Pbar_ref, G2_ref,
    wbig0_ref, bbig0_ref, wbigs_ref, bbigs_ref,
    wout_ref, bout_ref,
    out_ref,
):
    A = A_ref[...]          # (N, N)   edge scatter-mean operator
    G2 = G2_ref[...]        # (6H, 6H) blkdiag "sum over the 3 vector comps, bcast back"
    H3 = G2.shape[0] // 2   # 3 * HIDDEN

    def vn_layer(x, wbig, bbig, residual):
        # identity + pooling + direction-map linears fused into ONE MXU pass:
        #   z = [x | A @ x] @ [Wstack | Wstack @ Wdir3] + [b | b @ Wdir3]
        xa = jnp.dot(A, x, preferred_element_type=jnp.float32)
        z = jnp.dot(jnp.concatenate([x, xa], axis=1), wbig,
                    preferred_element_type=jnp.float32) + bbig
        y = z[:, :H3]           # identity + pooling linear output
        d = z[:, H3:]           # VN direction map of y

        # VNLeakyReLU with negative_slope == 0.0; dropout = identity (eval).
        # dotprod and ||d||^2 (sum over the 3 vector comps, broadcast back)
        # via a single fused block-diagonal matmul.
        red = jnp.dot(jnp.concatenate([y * d, d * d], axis=1), G2,
                      preferred_element_type=jnp.float32)
        dotprod = red[:, :H3]
        d_norm_sq = red[:, H3:]
        coef = dotprod * pl.reciprocal(d_norm_sq + EPS, approx=True)
        out = jnp.where(dotprod >= 0.0, y, y - coef * d)
        if residual:
            out = out + x
        return out

    # first set layer (no residual), then statically unrolled residual layers
    x = vn_layer(feat_ref[...], wbig0_ref[...], bbig0_ref[...], residual=False)
    for l in range(wbigs_ref.shape[0]):
        x = vn_layer(x, wbigs_ref[l], bbigs_ref[l], residual=True)

    # final per-batch mean pooling -> output linear -> broadcast back to nodes,
    # fused as:  out = Pbar @ (x @ Wout3) + bout3   (single lane-contiguous store)
    xo = jnp.dot(x, wout_ref[...], preferred_element_type=jnp.float32)     # (N, 3*OUT)
    out_ref[...] = jnp.dot(Pbar_ref[...], xo,
                           preferred_element_type=jnp.float32) + bout_ref[...]


# --------------------------------------------------------------------------- #
# Parameter init (torch nn.Linear default, weights stored (fan_in, fan_out))
# --------------------------------------------------------------------------- #
def init_params(key, hidden=HIDDEN, num_layers=NUM_LAYERS, in_dim=IN_DIM, out_dim=OUT_DIM):
    keys = iter(jax.random.split(key, 64))

    def lin(fan_in, fan_out, bias=True):
        bound = 1.0 / math.sqrt(fan_in)
        w = jax.random.uniform(next(keys), (fan_in, fan_out), jnp.float32, -bound, bound)
        if not bias:
            return w
        b = jax.random.uniform(next(keys), (1, fan_out), jnp.float32, -bound, bound)
        return w, b

    w_id0, b_id0 = lin(in_dim, hidden)
    w_pool0, b_pool0 = lin(in_dim, hidden)
    w_dir0 = lin(hidden, hidden, bias=False)

    w_ids, b_ids, w_pools, b_pools, w_dirs = [], [], [], [], []
    for _ in range(num_layers - 1):
        w, b = lin(hidden, hidden); w_ids.append(w); b_ids.append(b)
        w, b = lin(hidden, hidden); w_pools.append(w); b_pools.append(b)
        w_dirs.append(lin(hidden, hidden, bias=False))
    w_ids = jnp.stack(w_ids); b_ids = jnp.stack(b_ids)
    w_pools = jnp.stack(w_pools); b_pools = jnp.stack(b_pools)
    w_dirs = jnp.stack(w_dirs)

    w_out, b_out = lin(hidden, out_dim)

    return (w_id0, b_id0, w_pool0, b_pool0, w_dir0,
            w_ids, b_ids, w_pools, b_pools, w_dirs,
            w_out, b_out)


# --------------------------------------------------------------------------- #
# One-time weight preparation (kron expansion + fusion) — outside the jit path
# --------------------------------------------------------------------------- #
def _kron3(w):
    return jnp.kron(jnp.eye(3, dtype=jnp.float32), w)


def prepare_kernel_params(params):
    (w_id0, b_id0, w_pool0, b_pool0, w_dir0,
     w_ids, b_ids, w_pools, b_pools, w_dirs,
     w_out, b_out) = params
    H = HIDDEN

    def fuse(w_id, b_id, w_pool, b_pool, w_dir):
        wdir3 = _kron3(w_dir)                                              # (3H, 3H)
        wstack = jnp.concatenate([_kron3(w_id), _kron3(w_pool)], axis=0)   # (6Cin, 3H)
        bstack = jnp.tile(b_id + b_pool, (1, 3))                           # (1, 3H)
        wbig = jnp.concatenate([wstack, wstack @ wdir3], axis=1)           # (6Cin, 6H)
        bbig = jnp.concatenate([bstack, bstack @ wdir3], axis=1)           # (1, 6H)
        return wbig, bbig

    wbig0, bbig0 = fuse(w_id0, b_id0, w_pool0, b_pool0, w_dir0)
    fused = [fuse(w_ids[l], b_ids[l], w_pools[l], b_pools[l], w_dirs[l])
             for l in range(w_ids.shape[0])]
    wbigs = jnp.stack([f[0] for f in fused])                               # (L-1, 6H, 6H)
    bbigs = jnp.stack([f[1] for f in fused])                               # (L-1, 1, 6H)

    # fused "sum over vector dim, broadcast back" operator for [y*d | d*d]
    Gsum = jnp.kron(jnp.ones((3, 3), jnp.float32), jnp.eye(H, dtype=jnp.float32))
    G2 = jnp.kron(jnp.eye(2, dtype=jnp.float32), Gsum)                     # (6H, 6H)

    wout3 = _kron3(w_out)                                                  # (3H, 3*OUT)
    bout3 = jnp.tile(b_out, (1, 3))                                        # (1, 3*OUT)

    return dict(wbig0=wbig0, bbig0=bbig0, wbigs=wbigs, bbigs=bbigs,
                G2=G2, wout3=wout3, bout3=bout3)


# --------------------------------------------------------------------------- #
# JAX wrapper
# --------------------------------------------------------------------------- #
@partial(jax.jit, static_argnames=("batch_size",))
def vndeepsets_forward(kparams, nodes, loc, edges, vel, edge_attr, charges, batch_size):
    del nodes, edge_attr, charges  # unused for canon_feature='pv'
    N = loc.shape[0]
    loc = loc.astype(jnp.float32)
    vel = vel.astype(jnp.float32)

    # edge scatter with reduce='mean' as a row-normalised adjacency (N x N)
    A = jnp.zeros((N, N), jnp.float32).at[edges[1], edges[0]].add(1.0)
    A = A / jnp.maximum(A.sum(axis=1, keepdims=True), 1.0)

    # per-batch "mean & broadcast back to nodes" operator (N x N)
    # TODO(synk): hard-codes 5 contiguous bodies per batch, exactly like the reference forward.
    batch_indices = jnp.repeat(jnp.arange(batch_size), BODIES_PER_BATCH)
    same = (batch_indices[:, None] == batch_indices[None, :]).astype(jnp.float32)
    Pbar = same / float(BODIES_PER_BATCH)

    # features: mean-centred location + velocity, node-major v-major layout (N, 3*IN_DIM)
    mean_loc = Pbar @ loc
    canonical_loc = loc - mean_loc
    feat = jnp.stack([canonical_loc, vel], axis=2).reshape(N, 3 * IN_DIM)

    vmem = pl.BlockSpec(memory_space=pltpu.MemorySpace.VMEM)
    out_nodes = pl.pallas_call(
        vndeepsets_kernel,
        out_shape=jax.ShapeDtypeStruct((N, 3 * OUT_DIM), jnp.float32),
        in_specs=[vmem] * 10,
        out_specs=vmem,
    )(feat, A, Pbar, kparams["G2"],
      kparams["wbig0"], kparams["bbig0"], kparams["wbigs"], kparams["bbigs"],
      kparams["wout3"], kparams["bout3"])

    out = out_nodes.reshape(N, 3, OUT_DIM)
    rotation_vectors = out[:, :, :3]                 # (N, 3, 3)
    translation_vectors = out[:, :, 3] + mean_loc    # (N, 3), canon_translation=True
    return rotation_vectors, translation_vectors


# --------------------------------------------------------------------------- #
# Pure-JAX reference (mirrors the torch forward) for correctness checking
# --------------------------------------------------------------------------- #
def reference_forward(params, loc, edges, vel, batch_size):
    (w_id0, b_id0, w_pool0, b_pool0, w_dir0,
     w_ids, b_ids, w_pools, b_pools, w_dirs,
     w_out, b_out) = params
    N = loc.shape[0]

    batch_indices = jnp.repeat(jnp.arange(batch_size), BODIES_PER_BATCH)
    Eb = (batch_indices[:, None] == jnp.arange(batch_size)[None, :]).astype(jnp.float32)
    mean_loc = Eb @ ((Eb.T @ loc) / float(BODIES_PER_BATCH))
    canonical_loc = loc - mean_loc
    x = jnp.stack([canonical_loc, vel], axis=2)                 # (N, 3, IN_DIM)

    A = jnp.zeros((N, N), jnp.float32).at[edges[1], edges[0]].add(1.0)
    A = A / jnp.maximum(A.sum(axis=1, keepdims=True), 1.0)

    def layer(x, w_id, b_id, w_pool, b_pool, w_dir, residual):
        identity = x @ w_id + b_id
        pooled = jnp.einsum('nm,mvc->nvc', A, x)
        y = identity + (pooled @ w_pool + b_pool)
        d = y @ w_dir
        dot = (y * d).sum(axis=1, keepdims=True)
        dsq = (d * d).sum(axis=1, keepdims=True)
        out = jnp.where(dot >= 0.0, y, y - (dot / (dsq + EPS)) * d)
        if residual:
            out = out + x
        return out

    x = layer(x, w_id0, b_id0, w_pool0, b_pool0, w_dir0, False)
    for l in range(w_ids.shape[0]):
        x = layer(x, w_ids[l], b_ids[l], w_pools[l], b_pools[l], w_dirs[l], True)

    xb = jnp.einsum('nb,nvc->bvc', Eb, x) / float(BODIES_PER_BATCH)
    out = xb @ w_out + b_out                                    # (B, 3, OUT_DIM)
    out_nodes = jnp.einsum('nb,bvc->nvc', Eb, out)              # (N, 3, OUT_DIM)
    rot = out_nodes[:, :, :3]
    trans = out_nodes[:, :, 3] + mean_loc
    return rot, trans


# --------------------------------------------------------------------------- #
if __name__ == "__main__":
    key = jax.random.PRNGKey(0)
    k_loc, k_vel, k_ch, k_param = jax.random.split(key, 4)

    B = 2
    N = B * BODIES_PER_BATCH
    loc = jax.random.normal(k_loc, (N, 3), jnp.float32)
    vel = jax.random.normal(k_vel, (N, 3), jnp.float32)
    charges = jax.random.normal(k_ch, (N, 1), jnp.float32)
    nodes = jnp.zeros((N, 1), jnp.float32)

    # fully connected graph within each batch of 5 bodies (no self edges)
    rows, cols = [], []
    for b in range(B):
        for i in range(BODIES_PER_BATCH):
            for j in range(BODIES_PER_BATCH):
                if i != j:
                    rows.append(b * BODIES_PER_BATCH + i)   # scatter target
                    cols.append(b * BODIES_PER_BATCH + j)   # gathered source
    edges = jnp.array([cols, rows], dtype=jnp.int32)        # edges[0]=source, edges[1]=target
    edge_attr = jnp.zeros((edges.shape[1], 1), jnp.float32)

    params = init_params(k_param)
    kparams = prepare_kernel_params(params)   # one-time weight fusion, outside the jit path

    rot, trans = vndeepsets_forward(kparams, nodes, loc, edges, vel, edge_attr, charges, B)
    jax.block_until_ready((rot, trans))

    assert rot.shape == (N, 3, 3) and trans.shape == (N, 3)
    assert bool(jnp.all(jnp.isfinite(rot))) and bool(jnp.all(jnp.isfinite(trans)))

    # correctness vs. pure-JAX reference (loose tolerance: approx reciprocal in-kernel)
    with jax.default_matmul_precision("highest"):
        rot_ref, trans_ref = reference_forward(params, loc, edges, vel, B)
    assert jnp.allclose(rot, rot_ref, atol=2e-2, rtol=2e-2)
    assert jnp.allclose(trans, trans_ref, atol=2e-2, rtol=2e-2)

    # TODO(synk): dropout>0 / training-mode stochasticity not implemented (eval mode only).
    print("KERNEL_OK")
</pallas_src>

<mosaic_0001>
module attributes {stable_mosaic.version = 11 : i64} {
  func.func @vndeepsets_kernel(%arg0: memref<10x6xf32, #tpu.memory_space<vmem>>, %arg1: memref<10x10xf32, #tpu.memory_space<vmem>>, %arg2: memref<10x10xf32, #tpu.memory_space<vmem>>, %arg3: memref<96x96xf32, #tpu.memory_space<vmem>>, %arg4: memref<12x96xf32, #tpu.memory_space<vmem>>, %arg5: memref<1x96xf32, #tpu.memory_space<vmem>>, %arg6: memref<2x96x96xf32, #tpu.memory_space<vmem>>, %arg7: memref<2x1x96xf32, #tpu.memory_space<vmem>>, %arg8: memref<48x12xf32, #tpu.memory_space<vmem>>, %arg9: memref<1x12xf32, #tpu.memory_space<vmem>>, %arg10: memref<10x12xf32, #tpu.memory_space<vmem>>) attributes {dimension_semantics = [], scalar_prefetch = 0 : i64, scratch_operands = 0 : i64, tpu.core_type = #tpu.core_type<tc>} {
    %c0 = arith.constant 0 : index
    %c0_0 = arith.constant 0 : index
    %0 = vector.load %arg1[%c0, %c0_0] : memref<10x10xf32, #tpu.memory_space<vmem>>, vector<10x10xf32>
    %c0_1 = arith.constant 0 : index
    %c0_2 = arith.constant 0 : index
    %1 = vector.load %arg3[%c0_1, %c0_2] : memref<96x96xf32, #tpu.memory_space<vmem>>, vector<96x96xf32>
    %c0_3 = arith.constant 0 : index
    %c0_4 = arith.constant 0 : index
    %2 = vector.load %arg0[%c0_3, %c0_4] : memref<10x6xf32, #tpu.memory_space<vmem>>, vector<10x6xf32>
    %c0_5 = arith.constant 0 : index
    %c0_6 = arith.constant 0 : index
    %3 = vector.load %arg4[%c0_5, %c0_6] : memref<12x96xf32, #tpu.memory_space<vmem>>, vector<12x96xf32>
    %c0_7 = arith.constant 0 : index
    %c0_8 = arith.constant 0 : index
    %4 = vector.load %arg5[%c0_7, %c0_8] : memref<1x96xf32, #tpu.memory_space<vmem>>, vector<1x96xf32>
    %cst = arith.constant dense<0.000000e+00> : vector<10x6xf32>
    %5 = tpu.matmul %0, %2, %cst {dimension_numbers = #tpu.dot_dimension_numbers<[1], [0], [0], [1], [0, 0, 1, 1], [], []>} : vector<10x10xf32>, vector<10x6xf32>, vector<10x6xf32> -> vector<10x6xf32>
    %6 = tpu.concatenate %2, %5 in 1 : vector<10x6xf32>, vector<10x6xf32> -> vector<10x12xf32>
    %cst_9 = arith.constant dense<0.000000e+00> : vector<10x96xf32>
    %7 = tpu.matmul %6, %3, %cst_9 {dimension_numbers = #tpu.dot_dimension_numbers<[1], [0], [0], [1], [0, 0, 1, 1], [], []>} : vector<10x12xf32>, vector<12x96xf32>, vector<10x96xf32> -> vector<10x96xf32>
    %8 = vector.broadcast %4 : vector<1x96xf32> to vector<10x96xf32>
    %9 = arith.addf %7, %8 : vector<10x96xf32>
    %10 = vector.extract_strided_slice %9 {offsets = [0, 0], sizes = [10, 48], strides = [1, 1]} : vector<10x96xf32> to vector<10x48xf32>
    %11 = vector.extract_strided_slice %9 {offsets = [0, 48], sizes = [10, 48], strides = [1, 1]} : vector<10x96xf32> to vector<10x48xf32>
    %12 = arith.mulf %10, %11 : vector<10x48xf32>
    %13 = arith.mulf %11, %11 : vector<10x48xf32>
    %14 = tpu.concatenate %12, %13 in 1 : vector<10x48xf32>, vector<10x48xf32> -> vector<10x96xf32>
    %cst_10 = arith.constant dense<0.000000e+00> : vector<10x96xf32>
    %15 = tpu.matmul %14, %1, %cst_10 {dimension_numbers = #tpu.dot_dimension_numbers<[1], [0], [0], [1], [0, 0, 1, 1], [], []>} : vector<10x96xf32>, vector<96x96xf32>, vector<10x96xf32> -> vector<10x96xf32>
    %16 = vector.extract_strided_slice %15 {offsets = [0, 0], sizes = [10, 48], strides = [1, 1]} : vector<10x96xf32> to vector<10x48xf32>
    %17 = vector.extract_strided_slice %15 {offsets = [0, 48], sizes = [10, 48], strides = [1, 1]} : vector<10x96xf32> to vector<10x48xf32>
    %cst_11 = arith.constant 9.99999997E-7 : f32
    %18 = vector.broadcast %cst_11 : f32 to vector<10x48xf32>
    %19 = arith.addf %17, %18 : vector<10x48xf32>
    %20 = tpu.reciprocal %19 {approx = true} : vector<10x48xf32> -> vector<10x48xf32>
    %21 = arith.mulf %16, %20 : vector<10x48xf32>
    %cst_12 = arith.constant 0.000000e+00 : f32
    %22 = vector.broadcast %cst_12 : f32 to vector<10x48xf32>
    %23 = arith.cmpf oge, %16, %22 : vector<10x48xf32>
    %24 = arith.mulf %21, %11 : vector<10x48xf32>
    %25 = arith.subf %10, %24 : vector<10x48xf32>
    %26 = arith.select %23, %10, %25 : vector<10x48xi1>, vector<10x48xf32>
    %c0_13 = arith.constant 0 : index
    %c0_14 = arith.constant 0 : index
    %c0_15 = arith.constant 0 : index
    %27 = vector.load %arg6[%c0_13, %c0_14, %c0_15] : memref<2x96x96xf32, #tpu.memory_space<vmem>>, vector<1x96x96xf32>
    %28 = vector.shape_cast %27 : vector<1x96x96xf32> to vector<96x96xf32>
    %c0_16 = arith.constant 0 : index
    %c0_17 = arith.constant 0 : index
    %c0_18 = arith.constant 0 : index
    %29 = vector.load %arg7[%c0_16, %c0_17, %c0_18] : memref<2x1x96xf32, #tpu.memory_space<vmem>>, vector<1x1x96xf32>
    %30 = vector.shape_cast %29 : vector<1x1x96xf32> to vector<1x96xf32>
    %cst_19 = arith.constant dense<0.000000e+00> : vector<10x48xf32>
    %31 = tpu.matmul %0, %26, %cst_19 {dimension_numbers = #tpu.dot_dimension_numbers<[1], [0], [0], [1], [0, 0, 1, 1], [], []>} : vector<10x10xf32>, vector<10x48xf32>, vector<10x48xf32> -> vector<10x48xf32>
    %32 = tpu.concatenate %26, %31 in 1 : vector<10x48xf32>, vector<10x48xf32> -> vector<10x96xf32>
    %cst_20 = arith.constant dense<0.000000e+00> : vector<10x96xf32>
    %33 = tpu.matmul %32, %28, %cst_20 {dimension_numbers = #tpu.dot_dimension_numbers<[1], [0], [0], [1], [0, 0, 1, 1], [], []>} : vector<10x96xf32>, vector<96x96xf32>, vector<10x96xf32> -> vector<10x96xf32>
    %34 = vector.broadcast %30 : vector<1x96xf32> to vector<10x96xf32>
    %35 = arith.addf %33, %34 : vector<10x96xf32>
    %36 = vector.extract_strided_slice %35 {offsets = [0, 0], sizes = [10, 48], strides = [1, 1]} : vector<10x96xf32> to vector<10x48xf32>
    %37 = vector.extract_strided_slice %35 {offsets = [0, 48], sizes = [10, 48], strides = [1, 1]} : vector<10x96xf32> to vector<10x48xf32>
    %38 = arith.mulf %36, %37 : vector<10x48xf32>
    %39 = arith.mulf %37, %37 : vector<10x48xf32>
    %40 = tpu.concatenate %38, %39 in 1 : vector<10x48xf32>, vector<10x48xf32> -> vector<10x96xf32>
    %cst_21 = arith.constant dense<0.000000e+00> : vector<10x96xf32>
    %41 = tpu.matmul %40, %1, %cst_21 {dimension_numbers = #tpu.dot_dimension_numbers<[1], [0], [0], [1], [0, 0, 1, 1], [], []>} : vector<10x96xf32>, vector<96x96xf32>, vector<10x96xf32> -> vector<10x96xf32>
    %42 = vector.extract_strided_slice %41 {offsets = [0, 0], sizes = [10, 48], strides = [1, 1]} : vector<10x96xf32> to vector<10x48xf32>
    %43 = vector.extract_strided_slice %41 {offsets = [0, 48], sizes = [10, 48], strides = [1, 1]} : vector<10x96xf32> to vector<10x48xf32>
    %cst_22 = arith.constant 9.99999997E-7 : f32
    %44 = vector.broadcast %cst_22 : f32 to vector<10x48xf32>
    %45 = arith.addf %43, %44 : vector<10x48xf32>
    %46 = tpu.reciprocal %45 {approx = true} : vector<10x48xf32> -> vector<10x48xf32>
    %47 = arith.mulf %42, %46 : vector<10x48xf32>
    %cst_23 = arith.constant 0.000000e+00 : f32
    %48 = vector.broadcast %cst_23 : f32 to vector<10x48xf32>
    %49 = arith.cmpf oge, %42, %48 : vector<10x48xf32>
    %50 = arith.mulf %47, %37 : vector<10x48xf32>
    %51 = arith.subf %36, %50 : vector<10x48xf32>
    %52 = arith.select %49, %36, %51 : vector<10x48xi1>, vector<10x48xf32>
    %53 = arith.addf %52, %26 : vector<10x48xf32>
    %c1 = arith.constant 1 : index
    %c0_24 = arith.constant 0 : index
    %c0_25 = arith.constant 0 : index
    %54 = vector.load %arg6[%c1, %c0_24, %c0_25] : memref<2x96x96xf32, #tpu.memory_space<vmem>>, vector<1x96x96xf32>
    %55 = vector.shape_cast %54 : vector<1x96x96xf32> to vector<96x96xf32>
    %c1_26 = arith.constant 1 : index
    %c0_27 = arith.constant 0 : index
    %c0_28 = arith.constant 0 : index
    %56 = vector.load %arg7[%c1_26, %c0_27, %c0_28] : memref<2x1x96xf32, #tpu.memory_space<vmem>>, vector<1x1x96xf32>
    %57 = vector.shape_cast %56 : vector<1x1x96xf32> to vector<1x96xf32>
    %cst_29 = arith.constant dense<0.000000e+00> : vector<10x48xf32>
    %58 = tpu.matmul %0, %53, %cst_29 {dimension_numbers = #tpu.dot_dimension_numbers<[1], [0], [0], [1], [0, 0, 1, 1], [], []>} : vector<10x10xf32>, vector<10x48xf32>, vector<10x48xf32> -> vector<10x48xf32>
    %59 = tpu.concatenate %53, %58 in 1 : vector<10x48xf32>, vector<10x48xf32> -> vector<10x96xf32>
    %cst_30 = arith.constant dense<0.000000e+00> : vector<10x96xf32>
    %60 = tpu.matmul %59, %55, %cst_30 {dimension_numbers = #tpu.dot_dimension_numbers<[1], [0], [0], [1], [0, 0, 1, 1], [], []>} : vector<10x96xf32>, vector<96x96xf32>, vector<10x96xf32> -> vector<10x96xf32>
    %61 = vector.broadcast %57 : vector<1x96xf32> to vector<10x96xf32>
    %62 = arith.addf %60, %61 : vector<10x96xf32>
    %63 = vector.extract_strided_slice %62 {offsets = [0, 0], sizes = [10, 48], strides = [1, 1]} : vector<10x96xf32> to vector<10x48xf32>
    %64 = vector.extract_strided_slice %62 {offsets = [0, 48], sizes = [10, 48], strides = [1, 1]} : vector<10x96xf32> to vector<10x48xf32>
    %65 = arith.mulf %63, %64 : vector<10x48xf32>
    %66 = arith.mulf %64, %64 : vector<10x48xf32>
    %67 = tpu.concatenate %65, %66 in 1 : vector<10x48xf32>, vector<10x48xf32> -> vector<10x96xf32>
    %cst_31 = arith.constant dense<0.000000e+00> : vector<10x96xf32>
    %68 = tpu.matmul %67, %1, %cst_31 {dimension_numbers = #tpu.dot_dimension_numbers<[1], [0], [0], [1], [0, 0, 1, 1], [], []>} : vector<10x96xf32>, vector<96x96xf32>, vector<10x96xf32> -> vector<10x96xf32>
    %69 = vector.extract_strided_slice %68 {offsets = [0, 0], sizes = [10, 48], strides = [1, 1]} : vector<10x96xf32> to vector<10x48xf32>
    %70 = vector.extract_strided_slice %68 {offsets = [0, 48], sizes = [10, 48], strides = [1, 1]} : vector<10x96xf32> to vector<10x48xf32>
    %cst_32 = arith.constant 9.99999997E-7 : f32
    %71 = vector.broadcast %cst_32 : f32 to vector<10x48xf32>
    %72 = arith.addf %70, %71 : vector<10x48xf32>
    %73 = tpu.reciprocal %72 {approx = true} : vector<10x48xf32> -> vector<10x48xf32>
    %74 = arith.mulf %69, %73 : vector<10x48xf32>
    %cst_33 = arith.constant 0.000000e+00 : f32
    %75 = vector.broadcast %cst_33 : f32 to vector<10x48xf32>
    %76 = arith.cmpf oge, %69, %75 : vector<10x48xf32>
    %77 = arith.mulf %74, %64 : vector<10x48xf32>
    %78 = arith.subf %63, %77 : vector<10x48xf32>
    %79 = arith.select %76, %63, %78 : vector<10x48xi1>, vector<10x48xf32>
    %80 = arith.addf %79, %53 : vector<10x48xf32>
    %c0_34 = arith.constant 0 : index
    %c0_35 = arith.constant 0 : index
    %81 = vector.load %arg8[%c0_34, %c0_35] : memref<48x12xf32, #tpu.memory_space<vmem>>, vector<48x12xf32>
    %cst_36 = arith.constant dense<0.000000e+00> : vector<10x12xf32>
    %82 = tpu.matmul %80, %81, %cst_36 {dimension_numbers = #tpu.dot_dimension_numbers<[1], [0], [0], [1], [0, 0, 1, 1], [], []>} : vector<10x48xf32>, vector<48x12xf32>, vector<10x12xf32> -> vector<10x12xf32>
    %c0_37 = arith.constant 0 : index
    %c0_38 = arith.constant 0 : index
    %83 = vector.load %arg2[%c0_37, %c0_38] : memref<10x10xf32, #tpu.memory_space<vmem>>, vector<10x10xf32>
    %cst_39 = arith.constant dense<0.000000e+00> : vector<10x12xf32>
    %84 = tpu.matmul %83, %82, %cst_39 {dimension_numbers = #tpu.dot_dimension_numbers<[1], [0], [0], [1], [0, 0, 1, 1], [], []>} : vector<10x10xf32>, vector<10x12xf32>, vector<10x12xf32> -> vector<10x12xf32>
    %c0_40 = arith.constant 0 : index
    %c0_41 = arith.constant 0 : index
    %85 = vector.load %arg9[%c0_40, %c0_41] : memref<1x12xf32, #tpu.memory_space<vmem>>, vector<1x12xf32>
    %86 = vector.broadcast %85 : vector<1x12xf32> to vector<10x12xf32>
    %87 = arith.addf %84, %86 : vector<10x12xf32>
    %c0_42 = arith.constant 0 : index
    %c0_43 = arith.constant 0 : index
    %88 = vector.load %arg10[%c0_42, %c0_43] : memref<10x12xf32, #tpu.memory_space<vmem>>, vector<10x12xf32>
    tpu.vector_store %arg10[%c0_42, %c0_43], %87 {strides = array<i32>} : memref<10x12xf32, #tpu.memory_space<vmem>>, vector<10x12xf32>,
    return
  }
}

</mosaic_0001>

<bundles_post_ra>
// kernel: eq.8
= control target key start
LH: loop header
LB: loop body
LE: loop exit
PB: predicated region body
PF: predicated region fallthrough
CT: control target
= control target key end

     0   :  { %vm7_vm0 = vcmask 39936   ;;  %vm13_vm1 = vcmask 80936   ;;  %s39_s0 = inlined_call_operand.vmem [shape: s32[2,5], index: 0, kind: input, shape index: {}]   ;;  %s40_s1 = inlined_call_operand.vmem [shape: s32[10], index: 1, kind: output, shape index: {}]  }
   0x1   :  { %v4_v0 = vld [vmem:[%s39_s0] sm:$0x3]  ;;  %s22_s0 = smov 5  }
   0x2   :  { %5 = vst [vmem:[#allocation1] sm:$0x3] %v4_v0 }
   0x9   :  { %v10_v1 = vld [vmem:[#allocation1 + $0x1] sm:$0x1]   ;;  %v6_v2 = vld [vmem:[#allocation1] sm:$0x1]  }
   0xa   :  { %11 = vrot.lane.b32.xlu0 %v10_v1, %s22_s0  ;;  %8 = vst.msk [vmem:[#allocation0] sm:$0x1] %vm7_vm0, %v6_v2  }
  0x7c   :  { %v12_v3 = vpop.permute.xlu0 %11  }
  0x7d   :  { %14 = vst.msk [vmem:[#allocation0] sm:$0x1] %vm13_vm1, %v12_v3  }
  0x84   :  { %v18_v4 = vld [vmem:[#allocation0] sm:$0x1] }
  0x85   :  { %20 = vst [vmem:[%s40_s1] sm:$0x1] %v18_v4 }

// kernel: vndeepsets_forward.1
= control target key start
LH: loop header
LB: loop body
LE: loop exit
PB: predicated region body
PF: predicated region fallthrough
CT: control target
= control target key end

     0   :  { %vm61_vm0 = vcmask 1041408   ;;  %vm54_vm1 = vcmask 80896   ;;  %vm1670_vm2 = vmmov 1   ;;  %vm164_vm4 = vcmask 1043456   ;;  %s1672_s26 = smov 80   ;;  %s2044_s0 = inlined_call_operand.vmem [shape: f32[10,6], index: 0, kind: input, shape index: {}]   ;;  %s2045_s1 = inlined_call_operand.vmem [shape: f32[10,10], index: 1, kind: input, shape index: {}]   ;;  %s2046_s4 = inlined_call_operand.vmem [shape: f32[12,96], index: 4, kind: input, shape index: {}]   ;;  %s2047_s3 = inlined_call_operand.vmem [shape: f32[96,96], index: 3, kind: input, shape index: {}]   ;;  %s2048_s5 = inlined_call_operand.vmem [shape: f32[1,96], index: 5, kind: input, shape index: {}]   ;;  %s2049_s6 = inlined_call_operand.vmem [shape: f32[2,96,96], index: 6, kind: input, shape index: {}]   ;;  %s2050_s7 = inlined_call_operand.vmem [shape: f32[2,1,96], index: 7, kind: input, shape index: {}]   ;;  %s2051_s8 = inlined_call_operand.vmem [shape: f32[48,12], index: 8, kind: input, shape index: {}]   ;;  %s2052_s2 = inlined_call_operand.vmem [shape: f32[10,10], index: 2, kind: input, shape index: {}]   ;;  %s2053_s9 = inlined_call_operand.vmem [shape: f32[1,12], index: 9, kind: input, shape index: {}]   ;;  %s2054_s10 = inlined_call_operand.vmem [shape: f32[10,12], index: 10, kind: output, shape index: {}]  }
   0x1   :  { %v49_v0 = vld [vmem:[%s2044_s0] sm:$0xff]  ;;  %v50_v1 = vld [vmem:[%s2044_s0 + $0x8] sm:$0x3]  ;;  %vm1735_vm3 = vmpackc.low %vm61_vm0, %vm1670_vm2  ;;  %vm148_vm6 = vcmask 48128   ;;  %vm157_vm7 = vcmask 97280   ;;  %vm255_vm8 = vcmask 392192  }
   0x2   :  { %v1492_v3 = vpack.c.bf16 %v50_v1, %v49_v0  ;;  %v1742_v4 = vld [vmem:[%s2045_s1] sm:$0xff]  ;;  %v1753_v5 = vld [vmem:[%s2045_s1 + $0x8] sm:$0x3]  ;;  %vm1499_vm5 = vmpackc.low %vm164_vm4, %vm1670_vm2  ;;  %s1671_s1 = smov 6   ;;  %vm258_vm9 = vcmask 785408   ;;  %vm1159_vm0 = vcmask 91136  }
   0x3   :  { %1311 = vmatprep.mubr.msk.f32.mxu0 %vm54_vm1, %v1742_v4  ;;  %v51_v6 = vld [vmem:[%s2046_s4] sm:$0xff]  ;;  %v52_v7 = vld [vmem:[%s2046_s4 + $0x8] sm:$0xf]  ;;  %v39_v17 = vld [vmem:[%s2047_s3 + $0x10] sm:$0xff] }
   0x4   :  { %1494 = vmatprep.subr.msk.bf16.mxu0 %vm1735_vm3, %v1492_v3  ;;  %v1498_v8 = vpack.c.bf16 %v52_v7, %v51_v6  ;;  %v37_v15 = vld [vmem:[%s2047_s3] sm:$0xff]  ;;  %v38_v16 = vld [vmem:[%s2047_s3 + $0x8] sm:$0xff]  ;;  %v40_v19 = vld [vmem:[%s2047_s3 + $0x18] sm:$0xff] }
   0x5   :  { %1497 = vmatpush3.bf16.msk.msra.mxu0 %vm1735_vm3, %v1492_v3  ;;  %v1776_v18 = vpack.c.bf16 %v38_v16, %v37_v15  ;;  %v1781_v20 = vpack.c.bf16 %v40_v19, %v39_v17  ;;  %v41_v21 = vld [vmem:[%s2047_s3 + $0x20] sm:$0xff]  ;;  %v42_v22 = vld [vmem:[%s2047_s3 + $0x28] sm:$0xff]  ;;  %v43_v24 = vld [vmem:[%s2047_s3 + $0x30] sm:$0xff] }
   0x6   :  { %1500 = vmatprep.subr.msk.bf16.mxu1 %vm1499_vm5, %v1498_v8  ;;  %v1792_v23 = vpack.c.bf16 %v42_v22, %v41_v21  ;;  %v44_v25 = vld [vmem:[%s2047_s3 + $0x38] sm:$0xff]  ;;  %v45_v27 = vld [vmem:[%s2047_s3 + $0x40] sm:$0xff]  ;;  %v46_v28 = vld [vmem:[%s2047_s3 + $0x48] sm:$0xff] }
   0x7   :  { %1503 = vmatpush3.bf16.msk.msra.mxu1 %vm1499_vm5, %v1498_v8  ;;  %1505 = vmatprep.subr.bf16.mxu0 %v1776_v18  ;;  %v1802_v26 = vpack.c.bf16 %v44_v25, %v43_v24  ;;  %v1812_v29 = vpack.c.bf16 %v46_v28, %v45_v27  ;;  %v47_v30 = vld [vmem:[%s2047_s3 + $0x50] sm:$0xff]  ;;  %v48_v31 = vld [vmem:[%s2047_s3 + $0x58] sm:$0xff]  ;;  %v1168_v33 = vld [vmem:[%s2048_s5] ss:$0 sm:$0xff]  ;;  %s1673_s3 = smov 48  }
   0x8   :  { %1312 = vmatmul.mubr.msk.f32.vlgmr.msra.gmra.mrb[0].mxu0 %vm54_vm1, %v1753_v5  ;;  %v1823_v32 = vpack.c.bf16 %v48_v31, %v47_v30  ;;  %v362_v63 = vld [vmem:[%s2049_s6] sm:$0xff]  ;;  %v365_v6 = vld [vmem:[%s2049_s6 + $0x18] sm:$0xff]  ;;  %v371_v15 = vld [vmem:[%s2049_s6 + $0x48] sm:$0xff] }
   0x9   :  { %1507 = vmatpush3.bf16.msra.mxu0 %v1776_v18  ;;  %v366_v8 = vld [vmem:[%s2049_s6 + $0x20] sm:$0xff]  ;;  %v372_v17 = vld [vmem:[%s2049_s6 + $0x50] sm:$0xff]  ;;  %v373_v19 = vld [vmem:[%s2049_s6 + $0x58] sm:$0xff] }
   0xa   :  { %1509 = vmatprep.subr.bf16.mxu0 %v1781_v20  ;;  %v1554_v21 = vpack.c.bf16 %v373_v19, %v372_v17  ;;  %v1177_v31 = vld [vmem:[%s2050_s7] ss:$0 sm:$0xff] }
   0xd   :  { %1511 = vmatpush3.bf16.msra.mxu0 %v1781_v20 }
   0xe   :  { %1513 = vmatprep.subr.bf16.mxu0 %v1792_v23 }
  0x11   :  { %1515 = vmatpush3.bf16.msra.mxu0 %v1792_v23 }
  0x12   :  { %1517 = vmatprep.subr.bf16.mxu0 %v1802_v26 }
  0x15   :  { %1519 = vmatpush3.bf16.msra.mxu0 %v1802_v26 }
  0x16   :  { %1521 = vmatprep.subr.bf16.mxu0 %v1812_v29 }
  0x19   :  { %1523 = vmatpush3.bf16.msra.mxu0 %v1812_v29 }
  0x1a   :  { %1525 = vmatprep.subr.bf16.mxu0 %v1823_v32 }
  0x1d   :  { %1527 = vmatpush3.bf16.msra.mxu0 %v1823_v32 }
  0x1e   :  { %1559 = vmatprep.subr.bf16.mxu0 %v1776_v18 }
  0xdb   :  { %v1313_v9 = vpop.f32.mrb[0].mxu0 }
  0xdc   :  { %v131_v10 = vpop.f32.mrb[1].mxu0 }
  0xdd   :  { %142 = vrot.lane.b32.xlu0 %v131_v10, %s1671_s1 }
  0xe1   :  { %144 = vrot.lane.b32.xlu0 %v1313_v9, %s1671_s1  ;;  %v367_v9 = vld [vmem:[%s2049_s6 + $0x28] sm:$0xff] }
  0xe2   :  { %v1542_v10 = vpack.c.bf16 %v367_v9, %v366_v8  ;;  %v1191_v8 = vld [vmem:[%s2049_s6 + $0xa8] sm:$0xff] }
 0x14f   :  { %v143_v11 = vpop.permute.xlu0 %142 }
 0x150   :  { %v149_v12 = vsel %vm148_vm6, %v49_v0, %v143_v11  ;;  %v363_v0 = vld [vmem:[%s2049_s6 + $0x8] sm:$0xff]  ;;  %v368_v11 = vld [vmem:[%s2049_s6 + $0x30] sm:$0xff] }
 0x151   :  { %1318 = vmatprep.mubr.msk.f32.mxu1 %vm157_vm7, %v149_v12  ;;  %v1534_v3 = vpack.c.bf16 %v363_v0, %v362_v63  ;;  %v369_v12 = vld [vmem:[%s2049_s6 + $0x38] sm:$0xff]  ;;  %v1187_v63 = vld [vmem:[%s2049_s6 + $0x88] sm:$0xff] }
 0x153   :  { %v145_v13 = vpop.permute.xlu0 %144 }
 0x154   :  { %v150_v14 = vsel %vm148_vm6, %v50_v1, %v145_v13  ;;  %v364_v1 = vld [vmem:[%s2049_s6 + $0x10] sm:$0xff]  ;;  %v1546_v13 = vpack.c.bf16 %v369_v12, %v368_v11  ;;  %v1193_v11 = vld [vmem:[%s2049_s6 + $0xb8] sm:$0xff] }
 0x155   :  { %1319 = vmatmul.mubr.msk.f32.vlgmr.msra.gmra.mrb[0].mxu1 %vm157_vm7, %v150_v14  ;;  %v1538_v7 = vpack.c.bf16 %v365_v6, %v364_v1  ;;  %v370_v14 = vld [vmem:[%s2049_s6 + $0x40] sm:$0xff]  ;;  %v1188_v1 = vld [vmem:[%s2049_s6 + $0x90] sm:$0xff] }
 0x156   :  { %1352 = vmatprep.mubr.msk.f32.mxu1 %vm54_vm1, %v1742_v4  ;;  %v1550_v16 = vpack.c.bf16 %v371_v15, %v370_v14 }
 0x228   :  { %v1320_v34 = vpop.f32.mrb[0].mxu1 }
 0x229   :  { %v234_v35 = vpop.f32.mrb[1].mxu1  ;;  %v240_v37 = vadd.f32 %v1320_v34, %v1168_v33 }
 0x22a   :  { %v235_v36 = vadd.f32 %v1168_v33, %v234_v35 }
 0x22b   :  { %v254_v44 = vmul.f32 %v240_v37, %v240_v37 }
 0x22c   :  { %245 = vrot.lane.b32.xlu1 %v235_v36, %s1672_s26  ;;  %v253_v40 = vmul.f32 %v235_v36, %v235_v36 }
 0x230   :  { %247 = vrot.lane.b32.xlu1 %v240_v37, %s1672_s26 }
 0x29e   :  { %v246_v38 = vpop.permute.xlu1 %245 }
 0x29f   :  { %v251_v39 = vmul.f32 %v246_v38, %v235_v36 }
 0x2a1   :  { %v256_v41 = vsel %vm255_vm8, %v251_v39, %v253_v40 }
 0x2a2   :  { %v248_v42 = vpop.permute.xlu1 %247  ;;  %1345 = vmatprep.mubr.msk.f32.mxu0 %vm258_vm9, %v256_v41 }
 0x2a3   :  { %v252_v43 = vmul.f32 %v248_v42, %v240_v37 }
 0x2a5   :  { %v257_v45 = vsel %vm255_vm8, %v252_v43, %v254_v44 }
 0x2a6   :  { %1346 = vmatmul.mubr.msk.f32.vlgmr.msra.gmra.mrb[2].mxu0 %vm258_vm9, %v257_v45 }
 0x2a7   :  { %1561 = vmatpush3.bf16.msra.mxu0 %v1776_v18 }
 0x2a8   :  { %1563 = vmatprep.subr.bf16.mxu0 %v1781_v20 }
 0x2ab   :  { %1565 = vmatpush3.bf16.msra.mxu0 %v1781_v20 }
 0x2ac   :  { %1567 = vmatprep.subr.bf16.mxu0 %v1792_v23 }
 0x2af   :  { %1569 = vmatpush3.bf16.msra.mxu0 %v1792_v23 }
 0x2b0   :  { %1571 = vmatprep.subr.bf16.mxu0 %v1802_v26 }
 0x2b3   :  { %1573 = vmatpush3.bf16.msra.mxu0 %v1802_v26 }
 0x2b4   :  { %1575 = vmatprep.subr.bf16.mxu0 %v1812_v29 }
 0x2b7   :  { %1577 = vmatpush3.bf16.msra.mxu0 %v1812_v29 }
 0x2b8   :  { %1579 = vmatprep.subr.bf16.mxu0 %v1823_v32 }
 0x2bb   :  { %1581 = vmatpush3.bf16.msra.mxu0 %v1823_v32 }
 0x2bc   :  { %1613 = vmatprep.subr.bf16.mxu0 %v1776_v18 }
 0x379   :  { %v1347_v46 = vpop.f32.mrb[2].mxu0 }
 0x37a   :  { %v341_v47 = vadd.f32 1e-06, %v1347_v46  ;;  %v331_v48 = vpop.f32.mrb[3].mxu0  ;;  %vm355_vm10 = vcmp.ge.f32.partialorder %v1347_v46, 0.0 }
 0x37b   :  { %v340_v49 = vadd.f32 1e-06, %v331_v48  ;;  %vm354_vm11 = vcmp.ge.f32.partialorder %v331_v48, 0.0 }
 0x37c   :  { %1658 = vrcp.f32 %v341_v47 }
 0x37d   :  { %1660 = vrcp.f32 %v340_v49 }
 0x386   :  { %v1659_v50 = vpop.eup %1658 }
 0x387   :  { %v1661_v51 = vpop.eup %1660  ;;  %348 = vrot.lane.b32.xlu1 %v1659_v50, %s1672_s26 }
 0x388   :  { %346 = vrot.lane.b32.xlu0 %v1661_v51, %s1672_s26 }
 0x3f9   :  { %v349_v52 = vpop.permute.xlu1 %348 }
 0x3fa   :  { %v353_v53 = vmul.f32 %v1347_v46, %v349_v52  ;;  %v347_v54 = vpop.permute.xlu0 %346 }
 0x3fb   :  { %v352_v55 = vmul.f32 %v347_v54, %v331_v48 }
 0x3fc   :  { %v357_v56 = vmul.f32 %v353_v53, %v248_v42 }
 0x3fd   :  { %v356_v57 = vmul.f32 %v352_v55, %v246_v38 }
 0x3fe   :  { %v359_v58 = vsub.f32 %v240_v37, %v357_v56 }
 0x3ff   :  { %v358_v59 = vsub.f32 %v235_v36, %v356_v57  ;;  %v1182_v57 = vld [vmem:[%s2049_s6 + $0x60] sm:$0xff] }
 0x400   :  { %v1851_v60 = vsel %vm355_vm10, %v240_v37, %v359_v58  ;;  %v1183_v58 = vld [vmem:[%s2049_s6 + $0x68] sm:$0xff] }
 0x401   :  { %v1853_v61 = vsel %vm354_vm11, %v235_v36, %v358_v59  ;;  %v1184_v59 = vld [vmem:[%s2049_s6 + $0x70] sm:$0xff] }
 0x402   :  { %v1528_v62 = vpack.c.bf16 %v1851_v60, %v1853_v61 }
 0x404   :  { %1530 = vmatprep.subr.msk.bf16.mxu1 %vm1735_vm3, %v1528_v62 }
 0x405   :  { %1533 = vmatpush3.bf16.msk.msra.mxu1 %vm1735_vm3, %v1528_v62 }
 0x406   :  { %1535 = vmatprep.subr.bf16.mxu1 %v1534_v3 }
 0x408   :  { %1353 = vmatmul.mubr.msk.f32.vlgmr.msra.gmra.mrb[2].mxu1 %vm54_vm1, %v1753_v5 }
 0x409   :  { %1537 = vmatpush3.bf16.msra.mxu1 %v1534_v3  ;;  %v1189_v3 = vld [vmem:[%s2049_s6 + $0x98] sm:$0xff] }
 0x40a   :  { %1539 = vmatprep.subr.bf16.mxu1 %v1538_v7  ;;  %v1600_v6 = vpack.c.bf16 %v1189_v3, %v1188_v1 }
 0x40d   :  { %1541 = vmatpush3.bf16.msra.mxu1 %v1538_v7  ;;  %v1190_v7 = vld [vmem:[%s2049_s6 + $0xa0] sm:$0xff] }
 0x40e   :  { %1543 = vmatprep.subr.bf16.mxu1 %v1542_v10  ;;  %v1604_v9 = vpack.c.bf16 %v1191_v8, %v1190_v7 }
 0x411   :  { %1545 = vmatpush3.bf16.msra.mxu1 %v1542_v10  ;;  %v1192_v10 = vld [vmem:[%s2049_s6 + $0xb0] sm:$0xff] }
 0x412   :  { %1547 = vmatprep.subr.bf16.mxu1 %v1546_v13  ;;  %v1608_v12 = vpack.c.bf16 %v1193_v11, %v1192_v10 }
 0x415   :  { %1549 = vmatpush3.bf16.msra.mxu1 %v1546_v13 }
 0x416   :  { %1551 = vmatprep.subr.bf16.mxu1 %v1550_v16 }
 0x419   :  { %1553 = vmatpush3.bf16.msra.mxu1 %v1550_v16 }
 0x41a   :  { %1555 = vmatprep.subr.bf16.mxu1 %v1554_v21 }
 0x41d   :  { %1557 = vmatpush3.bf16.msra.mxu1 %v1554_v21  ;;  %v1198_v21 = vld [vmem:[%s2050_s7 + $0x1] ss:$0 sm:$0xff] }
 0x4db   :  { %v1354_v22 = vpop.f32.mrb[2].mxu1 }
 0x4dc   :  { %457 = vrot.lane.b32.xlu1 %v1354_v22, %s1673_s3  ;;  %v444_v24 = vpop.f32.mrb[3].mxu1 }
 0x4dd   :  { %455 = vrot.lane.b32.xlu0 %v444_v24, %s1673_s3 }
 0x54e   :  { %v458_v25 = vpop.permute.xlu1 %457 }
 0x54f   :  { %v456_v27 = vpop.permute.xlu0 %455  ;;  %v462_v30 = vsel %vm255_vm8, %v1851_v60, %v458_v25 }
 0x550   :  { %v461_v28 = vsel %vm255_vm8, %v1853_v61, %v456_v27 }
 0x551   :  { %1379 = vmatprep.mubr.msk.f32.mxu1 %vm258_vm9, %v461_v28 }
 0x552   :  { %1380 = vmatmul.mubr.msk.f32.vlgmr.msra.gmra.mrb[4].mxu1 %vm258_vm9, %v462_v30 }
 0x553   :  { %1413 = vmatprep.mubr.msk.f32.mxu1 %vm54_vm1, %v1742_v4 }
 0x625   :  { %v1381_v33 = vpop.f32.mrb[4].mxu1 }
 0x626   :  { %v547_v34 = vadd.f32 %v1381_v33, %v1177_v31  ;;  %v541_v35 = vpop.f32.mrb[5].mxu1 }
 0x627   :  { %v542_v36 = vadd.f32 %v1177_v31, %v541_v35 }
 0x628   :  { %554 = vrot.lane.b32.xlu1 %v547_v34, %s1672_s26  ;;  %v561_v42 = vmul.f32 %v547_v34, %v547_v34 }
 0x629   :  { %552 = vrot.lane.b32.xlu0 %v542_v36, %s1672_s26  ;;  %v560_v41 = vmul.f32 %v542_v36, %v542_v36 }
 0x69a   :  { %v555_v37 = vpop.permute.xlu1 %554 }
 0x69b   :  { %v559_v38 = vmul.f32 %v555_v37, %v547_v34  ;;  %v553_v39 = vpop.permute.xlu0 %552 }
 0x69c   :  { %v558_v40 = vmul.f32 %v553_v39, %v542_v36 }
 0x69d   :  { %v563_v43 = vsel %vm255_vm8, %v559_v38, %v561_v42  ;;  %v978_v38 = vld [vmem:[%s2051_s8] sm:$0xff] }
 0x69e   :  { %v562_v4 = vsel %vm255_vm8, %v558_v40, %v560_v41 }
 0x69f   :  { %1406 = vmatprep.mubr.msk.f32.mxu0 %vm258_vm9, %v562_v4 }
 0x6a0   :  { %1407 = vmatmul.mubr.msk.f32.vlgmr.msra.gmra.mrb[4].mxu0 %vm258_vm9, %v563_v43  ;;  %v980_v43 = vld [vmem:[%s2051_s8 + $0x10] sm:$0xff] }
 0x6a1   :  { %1615 = vmatpush3.bf16.msra.mxu0 %v1776_v18 }
 0x6a2   :  { %1617 = vmatprep.subr.bf16.mxu0 %v1781_v20 }
 0x6a5   :  { %1619 = vmatpush3.bf16.msra.mxu0 %v1781_v20 }
 0x6a6   :  { %1621 = vmatprep.subr.bf16.mxu0 %v1792_v23 }
 0x6a9   :  { %1623 = vmatpush3.bf16.msra.mxu0 %v1792_v23 }
 0x6aa   :  { %1625 = vmatprep.subr.bf16.mxu0 %v1802_v26 }
 0x6ad   :  { %1627 = vmatpush3.bf16.msra.mxu0 %v1802_v26 }
 0x6ae   :  { %1629 = vmatprep.subr.bf16.mxu0 %v1812_v29 }
 0x6b1   :  { %1631 = vmatpush3.bf16.msra.mxu0 %v1812_v29 }
 0x6b2   :  { %1633 = vmatprep.subr.bf16.mxu0 %v1823_v32 }
 0x6b5   :  { %1635 = vmatpush3.bf16.msra.mxu0 %v1823_v32 }
 0x773   :  { %v1408_v18 = vpop.f32.mrb[4].mxu0 }
 0x774   :  { %v646_v44 = vadd.f32 1e-06, %v1408_v18  ;;  %v636_v45 = vpop.f32.mrb[5].mxu0  ;;  %vm660_vm12 = vcmp.ge.f32.partialorder %v1408_v18, 0.0 }
 0x775   :  { %v645_v20 = vadd.f32 1e-06, %v636_v45  ;;  %vm659_vm13 = vcmp.ge.f32.partialorder %v636_v45, 0.0 }
 0x776   :  { %1662 = vrcp.f32 %v646_v44 }
 0x777   :  { %1664 = vrcp.f32 %v645_v20  ;;  %v982_v20 = vld [vmem:[%s2051_s8 + $0x20] sm:$0xff] }
 0x780   :  { %v1663_v46 = vpop.eup %1662 }
 0x781   :  { %v1665_v23 = vpop.eup %1664  ;;  %653 = vrot.lane.b32.xlu1 %v1663_v46, %s1672_s26  ;;  %v983_v46 = vld [vmem:[%s2051_s8 + $0x28] sm:$0xff] }
 0x782   :  { %651 = vrot.lane.b32.xlu0 %v1665_v23, %s1672_s26  ;;  %v1644_v23 = vpack.c.bf16 %v983_v46, %v982_v20 }
 0x7f3   :  { %v654_v26 = vpop.permute.xlu1 %653 }
 0x7f4   :  { %v658_v47 = vmul.f32 %v1408_v18, %v654_v26  ;;  %v652_v48 = vpop.permute.xlu0 %651  ;;  %v981_v18 = vld [vmem:[%s2051_s8 + $0x18] sm:$0xff] }
 0x7f5   :  { %v657_v29 = vmul.f32 %v652_v48, %v636_v45  ;;  %v1640_v45 = vpack.c.bf16 %v981_v18, %v980_v43 }
 0x7f6   :  { %v662_v49 = vmul.f32 %v658_v47, %v555_v37 }
 0x7f7   :  { %v661_v50 = vmul.f32 %v657_v29, %v553_v39  ;;  %v979_v39 = vld [vmem:[%s2051_s8 + $0x8] sm:$0xff] }
 0x7f8   :  { %v664_v51 = vsub.f32 %v547_v34, %v662_v49  ;;  %v1636_v40 = vpack.c.bf16 %v979_v39, %v978_v38 }
 0x7f9   :  { %v663_v32 = vsub.f32 %v542_v36, %v661_v50 }
 0x7fa   :  { %v666_v52 = vsel %vm660_vm12, %v547_v34, %v664_v51 }
 0x7fb   :  { %v1932_v53 = vadd.f32 %v666_v52, %v1851_v60  ;;  %v665_v54 = vsel %vm659_vm13, %v542_v36, %v663_v32  ;;  %v1588_v60 = vpack.c.bf16 %v1183_v58, %v1182_v57 }
 0x7fc   :  { %v1935_v55 = vadd.f32 %v665_v54, %v1853_v61  ;;  %v1185_v61 = vld [vmem:[%s2049_s6 + $0x78] sm:$0xff] }
 0x7fd   :  { %v1592_v62 = vpack.c.bf16 %v1185_v61, %v1184_v59 }
 0x7fe   :  { %v1582_v56 = vpack.c.bf16 %v1932_v53, %v1935_v55 }
 0x800   :  { %1584 = vmatprep.subr.msk.bf16.mxu1 %vm1735_vm3, %v1582_v56 }
 0x801   :  { %1587 = vmatpush3.bf16.msk.msra.mxu1 %vm1735_vm3, %v1582_v56 }
 0x802   :  { %1589 = vmatprep.subr.bf16.mxu1 %v1588_v60 }
 0x804   :  { %1414 = vmatmul.mubr.msk.f32.vlgmr.msra.gmra.mrb[6].mxu1 %vm54_vm1, %v1753_v5  ;;  %v1186_v5 = vld [vmem:[%s2049_s6 + $0x80] sm:$0xff] }
 0x805   :  { %1591 = vmatpush3.bf16.msra.mxu1 %v1588_v60  ;;  %v1596_v0 = vpack.c.bf16 %v1187_v63, %v1186_v5  ;;  %v1065_v60 = vld [vmem:[%s2052_s2] sm:$0xff] }
 0x806   :  { %1593 = vmatprep.subr.bf16.mxu1 %v1592_v62 }
 0x809   :  { %1595 = vmatpush3.bf16.msra.mxu1 %v1592_v62 }
 0x80a   :  { %1597 = vmatprep.subr.bf16.mxu1 %v1596_v0 }
 0x80d   :  { %1599 = vmatpush3.bf16.msra.mxu1 %v1596_v0 }
 0x80e   :  { %1601 = vmatprep.subr.bf16.mxu1 %v1600_v6 }
 0x811   :  { %1603 = vmatpush3.bf16.msra.mxu1 %v1600_v6 }
 0x812   :  { %1605 = vmatprep.subr.bf16.mxu1 %v1604_v9 }
 0x815   :  { %1607 = vmatpush3.bf16.msra.mxu1 %v1604_v9 }
 0x816   :  { %1609 = vmatprep.subr.bf16.mxu1 %v1608_v12 }
 0x819   :  { %1611 = vmatpush3.bf16.msra.mxu1 %v1608_v12 }
 0x81a   :  { %1637 = vmatprep.subr.bf16.mxu1 %v1636_v40 }
 0x8d7   :  { %v1415_v13 = vpop.f32.mrb[6].mxu1 }
 0x8d8   :  { %766 = vrot.lane.b32.xlu1 %v1415_v13, %s1673_s3  ;;  %v753_v14 = vpop.f32.mrb[7].mxu1 }
 0x8d9   :  { %764 = vrot.lane.b32.xlu0 %v753_v14, %s1673_s3 }
 0x94a   :  { %v767_v15 = vpop.permute.xlu1 %766 }
 0x94b   :  { %v765_v16 = vpop.permute.xlu0 %764  ;;  %v771_v19 = vsel %vm255_vm8, %v1932_v53, %v767_v15 }
 0x94c   :  { %v770_v17 = vsel %vm255_vm8, %v1935_v55, %v765_v16 }
 0x94d   :  { %1440 = vmatprep.mubr.msk.f32.mxu1 %vm258_vm9, %v770_v17 }
 0x94e   :  { %1441 = vmatmul.mubr.msk.f32.vlgmr.msra.gmra.mrb[8].mxu1 %vm258_vm9, %v771_v19 }
 0x94f   :  { %1639 = vmatpush3.bf16.msra.mxu1 %v1636_v40 }
 0x950   :  { %1641 = vmatprep.subr.bf16.mxu1 %v1640_v45 }
 0x953   :  { %1643 = vmatpush3.bf16.msra.mxu1 %v1640_v45 }
 0x954   :  { %1645 = vmatprep.subr.bf16.mxu1 %v1644_v23 }
 0x957   :  { %1647 = vmatpush3.bf16.msra.mxu1 %v1644_v23 }
 0xa21   :  { %v1442_v22 = vpop.f32.mrb[8].mxu1 }
 0xa22   :  { %v856_v24 = vadd.f32 %v1442_v22, %v1198_v21  ;;  %v850_v25 = vpop.f32.mrb[9].mxu1 }
 0xa23   :  { %v851_v27 = vadd.f32 %v1198_v21, %v850_v25 }
 0xa24   :  { %863 = vrot.lane.b32.xlu1 %v856_v24, %s1672_s26  ;;  %v870_v35 = vmul.f32 %v856_v24, %v856_v24 }
 0xa25   :  { %861 = vrot.lane.b32.xlu0 %v851_v27, %s1672_s26  ;;  %v869_v34 = vmul.f32 %v851_v27, %v851_v27 }
 0xa96   :  { %v864_v28 = vpop.permute.xlu1 %863 }
 0xa97   :  { %v868_v30 = vmul.f32 %v864_v28, %v856_v24  ;;  %v862_v31 = vpop.permute.xlu0 %861 }
 0xa98   :  { %v867_v33 = vmul.f32 %v862_v31, %v851_v27 }
 0xa99   :  { %v872_v37 = vsel %vm255_vm8, %v868_v30, %v870_v35 }
 0xa9a   :  { %v871_v36 = vsel %vm255_vm8, %v867_v33, %v869_v34 }
 0xa9b   :  { %1467 = vmatprep.mubr.msk.f32.mxu0 %vm258_vm9, %v871_v36 }
 0xa9c   :  { %1468 = vmatmul.mubr.msk.f32.vlgmr.msra.gmra.mrb[6].mxu0 %vm258_vm9, %v872_v37 }
 0xb6f   :  { %v1469_v41 = vpop.f32.mrb[6].mxu0 }
 0xb70   :  { %v955_v42 = vadd.f32 1e-06, %v1469_v41  ;;  %v945_v4 = vpop.f32.mrb[7].mxu0  ;;  %vm969_vm14 = vcmp.ge.f32.partialorder %v1469_v41, 0.0 }
 0xb71   :  { %v954_v44 = vadd.f32 1e-06, %v945_v4  ;;  %vm968_vm15 = vcmp.ge.f32.partialorder %v945_v4, 0.0 }
 0xb72   :  { %1666 = vrcp.f32 %v955_v42 }
 0xb73   :  { %1668 = vrcp.f32 %v954_v44 }
 0xb7c   :  { %v1667_v26 = vpop.eup %1666 }
 0xb7d   :  { %v1669_v47 = vpop.eup %1668  ;;  %962 = vrot.lane.b32.xlu1 %v1667_v26, %s1672_s26 }
 0xb7e   :  { %960 = vrot.lane.b32.xlu0 %v1669_v47, %s1672_s26 }
 0xbef   :  { %v963_v48 = vpop.permute.xlu1 %962 }
 0xbf0   :  { %v967_v29 = vmul.f32 %v1469_v41, %v963_v48  ;;  %v961_v49 = vpop.permute.xlu0 %960 }
 0xbf1   :  { %v966_v50 = vmul.f32 %v961_v49, %v945_v4 }
 0xbf2   :  { %v971_v51 = vmul.f32 %v967_v29, %v864_v28 }
 0xbf3   :  { %v970_v32 = vmul.f32 %v966_v50, %v862_v31 }
 0xbf4   :  { %v973_v52 = vsub.f32 %v856_v24, %v971_v51 }
 0xbf5   :  { %v972_v54 = vsub.f32 %v851_v27, %v970_v32 }
 0xbf6   :  { %v975_v56 = vsel %vm969_vm14, %v856_v24, %v973_v52 }
 0xbf7   :  { %v974_v57 = vsel %vm968_vm15, %v851_v27, %v972_v54  ;;  %v977_v59 = vadd.f32 %v975_v56, %v1932_v53  ;;  %v1066_v53 = vld [vmem:[%s2052_s2 + $0x8] sm:$0x3] }
 0xbf8   :  { %v976_v58 = vadd.f32 %v974_v57, %v1935_v55  ;;  %v1205_v55 = vld [vmem:[%s2053_s9] ss:$0 sm:$0xff] }
 0xbfa   :  { %1482 = vmatprep.mubr.msk.f32.mxu1 %vm255_vm8, %v976_v58 }
 0xbfb   :  { %1483 = vmatmul.mubr.msk.f32.vlgmr.msra.gmra.mrb[10].mxu1 %vm255_vm8, %v977_v59 }
 0xbfc   :  { %1489 = vmatprep.mubr.msk.f32.mxu1 %vm54_vm1, %v1065_v60 }
 0xcce   :  { %v1484_v61 = vpop.f32.mrb[10].mxu1 }
 0xccf   :  { %v1056_v62 = vpop.f32.mrb[11].mxu1 }
 0xcd0   :  { %v1648_v5 = vpack.c.bf16 %v1484_v61, %v1056_v62 }
 0xcd2   :  { %1650 = vmatprep.subr.msk.bf16.mxu1 %vm1735_vm3, %v1648_v5 }
 0xcd3   :  { %1653 = vmatpush3.bf16.msk.msra.mxu1 %vm1735_vm3, %v1648_v5 }
 0xcd6   :  { %1490 = vmatmul.mubr.msk.f32.vlgmr.msra.gmra.mrb[12].mxu1 %vm54_vm1, %v1066_v53 }
 0xda9   :  { %v1491_v63 = vpop.f32.mrb[12].mxu1 }
 0xdaa   :  { %v1155_v0 = vadd.f32 %v1491_v63, %v1205_v55  ;;  %v1149_v1 = vpop.f32.mrb[13].mxu1 }
 0xdab   :  { %v1150_v3 = vadd.f32 %v1205_v55, %v1149_v1 }
 0xdac   :  { %1160 = vst.msk [vmem:[%s2054_s10 + $0x8] sm:$0x3] %vm1159_vm0, %v1155_v0 }
 0xdad   :  { %1158 = vst.msk [vmem:[%s2054_s10] sm:$0xff] %vm157_vm7, %v1150_v3 }

</bundles_post_ra>
